<compile_context>
chip_gen: v5e
topology: v5e:2x2
jax: 0.10.0
libtpu: 0.0.40
codegen_flags: <defaults>
</compile_context>

<pallas_src>
import functools

import jax
import jax.numpy as jnp
from jax.experimental import pallas as pl
from jax.experimental.pallas import tpu as pltpu


def _round_up(x, m):
    return (x + m - 1) // m * m


# ----------------------------------------------------------------------------
# Pallas kernel: fc1 -> GRU step -> LayerNorm -> head(s), one batch tile
# ----------------------------------------------------------------------------
def _critic_kernel(*refs, dep_mode: bool):
    if dep_mode:
        (obs_ref, h_ref, act_ref, masks_ref, pa_ref,
         w1_ref, b1_ref,
         wir_ref, wiz_ref, win_ref, whr_ref, whz_ref, whn_ref,
         br_ref, bz_ref, bin_ref, bhn_ref,
         lng_ref, lnb_ref,
         whx_ref, wha_ref,
         wd1_ref, bd1_ref, whd_ref,
         bhead_ref,
         q_ref, h_out_ref) = refs
    else:
        (obs_ref, h_ref, act_ref, masks_ref,
         w1_ref, b1_ref,
         wir_ref, wiz_ref, win_ref, whr_ref, whz_ref, whn_ref,
         br_ref, bz_ref, bin_ref, bhn_ref,
         lng_ref, lnb_ref,
         whx_ref, wha_ref,
         bhead_ref,
         q_ref, h_out_ref) = refs

    f32 = jnp.float32

    # ---- fc1 + ReLU ------------------------------------------------------
    obs = obs_ref[...]                                              # (TB, D)
    x1 = jnp.maximum(
        jnp.dot(obs, w1_ref[...], preferred_element_type=f32) + b1_ref[...],
        0.0,
    )                                                               # (TB, H)

    # ---- GRU single step, per-gate weights (no (TB, 3H) lane slicing) ----
    h = h_ref[...] * masks_ref[...]                                 # (TB, H)
    r = jax.nn.sigmoid(
        jnp.dot(x1, wir_ref[...], preferred_element_type=f32)
        + jnp.dot(h, whr_ref[...], preferred_element_type=f32)
        + br_ref[...])
    z = jax.nn.sigmoid(
        jnp.dot(x1, wiz_ref[...], preferred_element_type=f32)
        + jnp.dot(h, whz_ref[...], preferred_element_type=f32)
        + bz_ref[...])
    gh_n = jnp.dot(h, whn_ref[...], preferred_element_type=f32) + bhn_ref[...]
    n = jnp.tanh(
        jnp.dot(x1, win_ref[...], preferred_element_type=f32) + bin_ref[...]
        + r * gh_n)
    h_new = (1.0 - z) * n + z * h                                   # (TB, H)

    # ---- LayerNorm on GRU output (the "x" branch) --------------------------
    mean = jnp.mean(h_new, axis=-1, keepdims=True)
    var = jnp.mean((h_new - mean) ** 2, axis=-1, keepdims=True)
    x = (h_new - mean) * jax.lax.rsqrt(var + 1e-5) * lng_ref[...] + lnb_ref[...]

    # ---- width-1 head(s): lane reduces on VPU/XLU, not N=1 MXU matmuls ----
    act = act_ref[...]                                              # (TB, A)
    q = (jnp.sum(x * whx_ref[...], axis=-1, keepdims=True)
         + jnp.sum(act * wha_ref[...], axis=-1, keepdims=True)
         + bhead_ref[0])                                            # (TB, 1)

    if dep_mode:
        # dep_in = dep_fc1(masked, flattened parents_actions)
        dep_in = (jnp.dot(pa_ref[...], wd1_ref[...], preferred_element_type=f32)
                  + bd1_ref[...])                                   # (TB, H)
        # (main-head and dep-head x/action/bias parts were folded in wrapper)
        q = q + jnp.sum(dep_in * whd_ref[...], axis=-1, keepdims=True)

    q_ref[...] = q
    h_out_ref[...] = h_new


# ----------------------------------------------------------------------------
# Wrapper
# ----------------------------------------------------------------------------
@functools.partial(jax.jit, static_argnames=("dep_mode",))
def r_critic_forward(params, obs, rnn_states, action, masks,
                     parents_actions, execution_mask, dep_mode: bool):
    B, OBS = obs.shape
    H = params["w1"].shape[1]
    A = action.shape[-1]
    PA = parents_actions.shape[-2] * parents_actions.shape[-1]

    # ---- static parameter transforms (per-gate GRU split, head folding) ----
    wi, wh = params["gru_wi"], params["gru_wh"]
    bi, bh = params["gru_bi"], params["gru_bh"]
    wir, wiz, win = wi[:, :H], wi[:, H:2 * H], wi[:, 2 * H:]
    whr, whz, whn = wh[:, :H], wh[:, H:2 * H], wh[:, 2 * H:]
    br = bi[:, :H] + bh[:, :H]
    bz = bi[:, H:2 * H] + bh[:, H:2 * H]
    bin_ = bi[:, 2 * H:]
    bhn = bh[:, 2 * H:]

    w2x_row = params["w2x"].reshape(1, H)
    w2a_row = params["w2a"].reshape(1, A)
    if dep_mode:
        whx = w2x_row + params["wd2x"].reshape(1, H)
        wha = w2a_row + params["wd2a"].reshape(1, A)
        whd = params["wd2d"].reshape(1, H)
        b_head = (params["b2"] + params["bd2"]).reshape(1)
    else:
        whx, wha = w2x_row, w2a_row
        b_head = params["b2"].reshape(1)

    # ---- batch tiling & padding --------------------------------------------
    TB = min(512, _round_up(B, 8))          # multiple of 8, capped for v7x VMEM
    B_pad = _round_up(B, TB)
    grid = (B_pad // TB,)

    def pad(a):
        if a.shape[0] == B_pad:
            return a
        return jnp.pad(a, ((0, B_pad - B),) + ((0, 0),) * (a.ndim - 1))

    h_in = rnn_states[:, 0, :]                                      # recurrent_N = 1
    data_inputs = [pad(obs), pad(h_in), pad(action), pad(masks)]
    data_specs = [
        pl.BlockSpec((TB, OBS), lambda i: (i, 0)),
        pl.BlockSpec((TB, H), lambda i: (i, 0)),
        pl.BlockSpec((TB, A), lambda i: (i, 0)),
        pl.BlockSpec((TB, 1), lambda i: (i, 0)),
    ]

    if dep_mode:
        # mask + flatten once here (no jnp.repeat, no extra (B, N_ag*A) mask array)
        pa_masked = (parents_actions * execution_mask[..., None]).reshape(B, PA)
        data_inputs.append(pad(pa_masked))
        data_specs.append(pl.BlockSpec((TB, PA), lambda i: (i, 0)))

    param_inputs = [
        params["w1"], params["b1"],
        wir, wiz, win, whr, whz, whn,
        br, bz, bin_, bhn,
        params["ln_g"], params["ln_b"],
        whx, wha,
    ]
    if dep_mode:
        param_inputs += [params["wd1"], params["bd1"], whd]

    # full-array blocks with constant index_map -> stay resident across grid steps
    param_specs = [pl.BlockSpec(p.shape, lambda i: (0, 0)) for p in param_inputs]

    smem_spec = pl.BlockSpec(memory_space=pltpu.MemorySpace.SMEM)   # head bias scalar

    all_inputs = data_inputs + param_inputs + [b_head]
    in_specs = data_specs + param_specs + [smem_spec]

    kernel = functools.partial(_critic_kernel, dep_mode=dep_mode)

    q_pad, h_pad = pl.pallas_call(
        kernel,
        grid=grid,
        out_shape=(
            jax.ShapeDtypeStruct((B_pad, 1), jnp.float32),
            jax.ShapeDtypeStruct((B_pad, H), jnp.float32),
        ),
        in_specs=in_specs,
        out_specs=(
            pl.BlockSpec((TB, 1), lambda i: (i, 0)),
            pl.BlockSpec((TB, H), lambda i: (i, 0)),
        ),
        compiler_params=pltpu.CompilerParams(
            dimension_semantics=("parallel",),
            vmem_limit_bytes=32 * 1024 * 1024,
        ),
    )(*all_inputs)

    return q_pad[:B], h_pad[:B, None, :]                            # (B,1), (B,1,H)


# ----------------------------------------------------------------------------
# Deterministic parameter init (synthetic; mirrors layer shapes in __init__)
# ----------------------------------------------------------------------------
def init_params(key, obs_dim, hidden, action_dim, num_agents):
    ks = jax.random.split(key, 16)
    s = 0.1

    def w(k, shape):
        return jax.random.normal(k, shape, jnp.float32) * s

    return dict(
        # fc1: Linear(obs_dim, hidden) -> stored transposed (obs_dim, hidden)
        w1=w(ks[0], (obs_dim, hidden)),
        b1=w(ks[1], (1, hidden)),
        # GRU(hidden, hidden, num_layers=1): weight_{ih,hh} transposed to (H, 3H)
        gru_wi=w(ks[2], (hidden, 3 * hidden)),
        gru_wh=w(ks[3], (hidden, 3 * hidden)),
        gru_bi=w(ks[4], (1, 3 * hidden)),
        gru_bh=w(ks[5], (1, 3 * hidden)),
        # LayerNorm(hidden)
        ln_g=jnp.ones((1, hidden), jnp.float32),
        ln_b=jnp.zeros((1, hidden), jnp.float32),
        # fc2: Linear(hidden + action_dim, 1), split into x / action parts
        w2x=w(ks[6], (hidden, 1)),
        w2a=w(ks[7], (action_dim, 1)),
        b2=w(ks[8], (1, 1)),
        # dep_fc1: Linear(action_dim * num_agents, hidden)
        wd1=w(ks[9], (action_dim * num_agents, hidden)),
        bd1=w(ks[10], (1, hidden)),
        # dep_fc2: Linear(hidden + hidden + action_dim, 1), split into 3 parts
        wd2x=w(ks[11], (hidden, 1)),
        wd2d=w(ks[12], (hidden, 1)),
        wd2a=w(ks[13], (action_dim, 1)),
        bd2=w(ks[14], (1, 1)),
    )


# ----------------------------------------------------------------------------
# Pure-JAX reference (same math as the PyTorch module) for a correctness check
# ----------------------------------------------------------------------------
def r_critic_reference(params, obs, rnn_states, action, masks,
                       parents_actions, execution_mask, dep_mode: bool):
    H = params["w1"].shape[1]
    x1 = jax.nn.relu(obs @ params["w1"] + params["b1"])
    h = rnn_states[:, 0, :] * masks
    gi = x1 @ params["gru_wi"] + params["gru_bi"]
    gh = h @ params["gru_wh"] + params["gru_bh"]
    r = jax.nn.sigmoid(gi[:, :H] + gh[:, :H])
    z = jax.nn.sigmoid(gi[:, H:2 * H] + gh[:, H:2 * H])
    n = jnp.tanh(gi[:, 2 * H:] + r * gh[:, 2 * H:])
    h_new = (1.0 - z) * n + z * h
    mean = jnp.mean(h_new, axis=-1, keepdims=True)
    var = jnp.mean((h_new - mean) ** 2, axis=-1, keepdims=True)
    x = (h_new - mean) * jax.lax.rsqrt(var + 1e-5) * params["ln_g"] + params["ln_b"]
    q = x @ params["w2x"] + action @ params["w2a"] + params["b2"]
    pa = (parents_actions * execution_mask[..., None]).reshape(obs.shape[0], -1)
    dep_in = pa @ params["wd1"] + params["bd1"]
    if dep_mode:
        q = q + (x @ params["wd2x"] + dep_in @ params["wd2d"]
                 + action @ params["wd2a"] + params["bd2"])
    return q, h_new[:, None, :]


if __name__ == "__main__":
    # Small shapes consistent with the module's forward.
    B = 8            # batch (threads * agents flattened)
    OBS_DIM = 48     # obs feature dim
    H = 32           # args.hidden_size
    A = 1            # Discrete action space -> action_dim = 1
    N_AG = 3         # args.num_agents
    REC_N = 1        # args.recurrent_N

    key = jax.random.PRNGKey(0)
    kp, k1, k2, k3, k4, k5, k6 = jax.random.split(key, 7)

    params = init_params(kp, OBS_DIM, H, A, N_AG)

    obs = jax.random.normal(k1, (B, OBS_DIM), jnp.float32)
    rnn_states = jax.random.normal(k2, (B, REC_N, H), jnp.float32)
    action = jax.random.normal(k3, (B, A), jnp.float32)
    masks = (jax.random.uniform(k4, (B, 1)) > 0.2).astype(jnp.float32)
    parents_actions = jax.random.normal(k5, (B, N_AG, A), jnp.float32)
    execution_mask = (jax.random.uniform(k6, (B, N_AG)) > 0.5).astype(jnp.float32)

    for dep_mode in (True, False):
        q, new_rnn_states = r_critic_forward(
            params, obs, rnn_states, action, masks,
            parents_actions, execution_mask, dep_mode)
        jax.block_until_ready((q, new_rnn_states))

        q_ref, h_ref = r_critic_reference(
            params, obs, rnn_states, action, masks,
            parents_actions, execution_mask, dep_mode)

        assert q.shape == (B, 1) and new_rnn_states.shape == (B, REC_N, H)
        assert jnp.allclose(q, q_ref, rtol=1e-3, atol=1e-4), f"q mismatch (dep_mode={dep_mode})"
        assert jnp.allclose(new_rnn_states, h_ref, rtol=1e-3, atol=1e-4), \
            f"rnn_states mismatch (dep_mode={dep_mode})"

    print("KERNEL_OK")
</pallas_src>

<mosaic_0001>
module attributes {stable_mosaic.version = 11 : i64} {
  func.func @_critic_kernel(%arg0: i32, %arg1: memref<8x48xf32, #tpu.memory_space<vmem>>, %arg2: memref<8x32xf32, #tpu.memory_space<vmem>>, %arg3: memref<8x1xf32, #tpu.memory_space<vmem>>, %arg4: memref<8x1xf32, #tpu.memory_space<vmem>>, %arg5: memref<8x3xf32, #tpu.memory_space<vmem>>, %arg6: memref<48x32xf32, #tpu.memory_space<vmem>>, %arg7: memref<1x32xf32, #tpu.memory_space<vmem>>, %arg8: memref<32x32xf32, #tpu.memory_space<vmem>>, %arg9: memref<32x32xf32, #tpu.memory_space<vmem>>, %arg10: memref<32x32xf32, #tpu.memory_space<vmem>>, %arg11: memref<32x32xf32, #tpu.memory_space<vmem>>, %arg12: memref<32x32xf32, #tpu.memory_space<vmem>>, %arg13: memref<32x32xf32, #tpu.memory_space<vmem>>, %arg14: memref<1x32xf32, #tpu.memory_space<vmem>>, %arg15: memref<1x32xf32, #tpu.memory_space<vmem>>, %arg16: memref<1x32xf32, #tpu.memory_space<vmem>>, %arg17: memref<1x32xf32, #tpu.memory_space<vmem>>, %arg18: memref<1x32xf32, #tpu.memory_space<vmem>>, %arg19: memref<1x32xf32, #tpu.memory_space<vmem>>, %arg20: memref<1x32xf32, #tpu.memory_space<vmem>>, %arg21: memref<1x1xf32, #tpu.memory_space<vmem>>, %arg22: memref<3x32xf32, #tpu.memory_space<vmem>>, %arg23: memref<1x32xf32, #tpu.memory_space<vmem>>, %arg24: memref<1x32xf32, #tpu.memory_space<vmem>>, %arg25: memref<1xf32, #tpu.memory_space<smem>>, %arg26: memref<8x1xf32, #tpu.memory_space<vmem>>, %arg27: memref<8x32xf32, #tpu.memory_space<vmem>>) attributes {dimension_semantics = [#tpu.dimension_semantics<parallel>], iteration_bounds = array<i64: 1>, scalar_prefetch = 0 : i64, scratch_operands = 0 : i64, tpu.core_type = #tpu.core_type<tc>, window_params = [{transform_indices = @transform_0, window_bounds = array<i64: 8, 48>}, {transform_indices = @transform_1, window_bounds = array<i64: 8, 32>}, {transform_indices = @transform_2, window_bounds = array<i64: 8, 1>}, {transform_indices = @transform_3, window_bounds = array<i64: 8, 1>}, {transform_indices = @transform_4, window_bounds = array<i64: 8, 3>}, {pipeline_mode = #tpu.pipeline_mode<synchronous>, transform_indices = @transform_5, window_bounds = array<i64: 48, 32>}, {pipeline_mode = #tpu.pipeline_mode<synchronous>, transform_indices = @transform_6, window_bounds = array<i64: 1, 32>}, {pipeline_mode = #tpu.pipeline_mode<synchronous>, transform_indices = @transform_7, window_bounds = array<i64: 32, 32>}, {pipeline_mode = #tpu.pipeline_mode<synchronous>, transform_indices = @transform_8, window_bounds = array<i64: 32, 32>}, {pipeline_mode = #tpu.pipeline_mode<synchronous>, transform_indices = @transform_9, window_bounds = array<i64: 32, 32>}, {pipeline_mode = #tpu.pipeline_mode<synchronous>, transform_indices = @transform_10, window_bounds = array<i64: 32, 32>}, {pipeline_mode = #tpu.pipeline_mode<synchronous>, transform_indices = @transform_11, window_bounds = array<i64: 32, 32>}, {pipeline_mode = #tpu.pipeline_mode<synchronous>, transform_indices = @transform_12, window_bounds = array<i64: 32, 32>}, {pipeline_mode = #tpu.pipeline_mode<synchronous>, transform_indices = @transform_13, window_bounds = array<i64: 1, 32>}, {pipeline_mode = #tpu.pipeline_mode<synchronous>, transform_indices = @transform_14, window_bounds = array<i64: 1, 32>}, {pipeline_mode = #tpu.pipeline_mode<synchronous>, transform_indices = @transform_15, window_bounds = array<i64: 1, 32>}, {pipeline_mode = #tpu.pipeline_mode<synchronous>, transform_indices = @transform_16, window_bounds = array<i64: 1, 32>}, {pipeline_mode = #tpu.pipeline_mode<synchronous>, transform_indices = @transform_17, window_bounds = array<i64: 1, 32>}, {pipeline_mode = #tpu.pipeline_mode<synchronous>, transform_indices = @transform_18, window_bounds = array<i64: 1, 32>}, {pipeline_mode = #tpu.pipeline_mode<synchronous>, transform_indices = @transform_19, window_bounds = array<i64: 1, 32>}, {pipeline_mode = #tpu.pipeline_mode<synchronous>, transform_indices = @transform_20, window_bounds = array<i64: 1, 1>}, {pipeline_mode = #tpu.pipeline_mode<synchronous>, transform_indices = @transform_21, window_bounds = array<i64: 3, 32>}, {pipeline_mode = #tpu.pipeline_mode<synchronous>, transform_indices = @transform_22, window_bounds = array<i64: 1, 32>}, {pipeline_mode = #tpu.pipeline_mode<synchronous>, transform_indices = @transform_23, window_bounds = array<i64: 1, 32>}, {transform_indices = @transform_24, window_bounds = array<i64: 1>}, {transform_indices = @transform_25, window_bounds = array<i64: 8, 1>}, {transform_indices = @transform_26, window_bounds = array<i64: 8, 32>}]} {
    %c0 = arith.constant 0 : index
    %c0_0 = arith.constant 0 : index
    %0 = vector.load %arg1[%c0, %c0_0] : memref<8x48xf32, #tpu.memory_space<vmem>>, vector<8x48xf32>
    %c0_1 = arith.constant 0 : index
    %c0_2 = arith.constant 0 : index
    %1 = vector.load %arg6[%c0_1, %c0_2] : memref<48x32xf32, #tpu.memory_space<vmem>>, vector<48x32xf32>
    %cst = arith.constant dense<0.000000e+00> : vector<8x32xf32>
    %2 = tpu.matmul %0, %1, %cst {dimension_numbers = #tpu.dot_dimension_numbers<[1], [0], [0], [1], [0, 0, 1, 1], [], []>} : vector<8x48xf32>, vector<48x32xf32>, vector<8x32xf32> -> vector<8x32xf32>
    %c0_3 = arith.constant 0 : index
    %c0_4 = arith.constant 0 : index
    %3 = vector.load %arg7[%c0_3, %c0_4] : memref<1x32xf32, #tpu.memory_space<vmem>>, vector<1x32xf32>
    %4 = vector.broadcast %3 : vector<1x32xf32> to vector<8x32xf32>
    %5 = arith.addf %2, %4 : vector<8x32xf32>
    %cst_5 = arith.constant 0.000000e+00 : f32
    %6 = vector.broadcast %cst_5 : f32 to vector<8x32xf32>
    %7 = arith.maximumf %5, %6 : vector<8x32xf32>
    %c0_6 = arith.constant 0 : index
    %c0_7 = arith.constant 0 : index
    %8 = vector.load %arg2[%c0_6, %c0_7] : memref<8x32xf32, #tpu.memory_space<vmem>>, vector<8x32xf32>
    %c0_8 = arith.constant 0 : index
    %c0_9 = arith.constant 0 : index
    %9 = vector.load %arg4[%c0_8, %c0_9] : memref<8x1xf32, #tpu.memory_space<vmem>>, vector<8x1xf32>
    %10 = vector.broadcast %9 : vector<8x1xf32> to vector<8x32xf32>
    %11 = arith.mulf %8, %10 : vector<8x32xf32>
    %c0_10 = arith.constant 0 : index
    %c0_11 = arith.constant 0 : index
    %12 = vector.load %arg8[%c0_10, %c0_11] : memref<32x32xf32, #tpu.memory_space<vmem>>, vector<32x32xf32>
    %cst_12 = arith.constant dense<0.000000e+00> : vector<8x32xf32>
    %13 = tpu.matmul %7, %12, %cst_12 {dimension_numbers = #tpu.dot_dimension_numbers<[1], [0], [0], [1], [0, 0, 1, 1], [], []>} : vector<8x32xf32>, vector<32x32xf32>, vector<8x32xf32> -> vector<8x32xf32>
    %c0_13 = arith.constant 0 : index
    %c0_14 = arith.constant 0 : index
    %14 = vector.load %arg11[%c0_13, %c0_14] : memref<32x32xf32, #tpu.memory_space<vmem>>, vector<32x32xf32>
    %cst_15 = arith.constant dense<0.000000e+00> : vector<8x32xf32>
    %15 = tpu.matmul %11, %14, %cst_15 {dimension_numbers = #tpu.dot_dimension_numbers<[1], [0], [0], [1], [0, 0, 1, 1], [], []>} : vector<8x32xf32>, vector<32x32xf32>, vector<8x32xf32> -> vector<8x32xf32>
    %16 = arith.addf %13, %15 : vector<8x32xf32>
    %c0_16 = arith.constant 0 : index
    %c0_17 = arith.constant 0 : index
    %17 = vector.load %arg14[%c0_16, %c0_17] : memref<1x32xf32, #tpu.memory_space<vmem>>, vector<1x32xf32>
    %18 = vector.broadcast %17 : vector<1x32xf32> to vector<8x32xf32>
    %19 = arith.addf %16, %18 : vector<8x32xf32>
    %20 = arith.negf %19 : vector<8x32xf32>
    %21 = math.exp %20 : vector<8x32xf32>
    %cst_18 = arith.constant 1.000000e+00 : f32
    %22 = vector.broadcast %cst_18 : f32 to vector<8x32xf32>
    %23 = arith.addf %22, %21 : vector<8x32xf32>
    %24 = arith.divf %22, %23 : vector<8x32xf32>
    %c0_19 = arith.constant 0 : index
    %c0_20 = arith.constant 0 : index
    %25 = vector.load %arg9[%c0_19, %c0_20] : memref<32x32xf32, #tpu.memory_space<vmem>>, vector<32x32xf32>
    %cst_21 = arith.constant dense<0.000000e+00> : vector<8x32xf32>
    %26 = tpu.matmul %7, %25, %cst_21 {dimension_numbers = #tpu.dot_dimension_numbers<[1], [0], [0], [1], [0, 0, 1, 1], [], []>} : vector<8x32xf32>, vector<32x32xf32>, vector<8x32xf32> -> vector<8x32xf32>
    %c0_22 = arith.constant 0 : index
    %c0_23 = arith.constant 0 : index
    %27 = vector.load %arg12[%c0_22, %c0_23] : memref<32x32xf32, #tpu.memory_space<vmem>>, vector<32x32xf32>
    %cst_24 = arith.constant dense<0.000000e+00> : vector<8x32xf32>
    %28 = tpu.matmul %11, %27, %cst_24 {dimension_numbers = #tpu.dot_dimension_numbers<[1], [0], [0], [1], [0, 0, 1, 1], [], []>} : vector<8x32xf32>, vector<32x32xf32>, vector<8x32xf32> -> vector<8x32xf32>
    %29 = arith.addf %26, %28 : vector<8x32xf32>
    %c0_25 = arith.constant 0 : index
    %c0_26 = arith.constant 0 : index
    %30 = vector.load %arg15[%c0_25, %c0_26] : memref<1x32xf32, #tpu.memory_space<vmem>>, vector<1x32xf32>
    %31 = vector.broadcast %30 : vector<1x32xf32> to vector<8x32xf32>
    %32 = arith.addf %29, %31 : vector<8x32xf32>
    %33 = arith.negf %32 : vector<8x32xf32>
    %34 = math.exp %33 : vector<8x32xf32>
    %cst_27 = arith.constant 1.000000e+00 : f32
    %35 = vector.broadcast %cst_27 : f32 to vector<8x32xf32>
    %36 = arith.addf %35, %34 : vector<8x32xf32>
    %37 = arith.divf %35, %36 : vector<8x32xf32>
    %c0_28 = arith.constant 0 : index
    %c0_29 = arith.constant 0 : index
    %38 = vector.load %arg13[%c0_28, %c0_29] : memref<32x32xf32, #tpu.memory_space<vmem>>, vector<32x32xf32>
    %cst_30 = arith.constant dense<0.000000e+00> : vector<8x32xf32>
    %39 = tpu.matmul %11, %38, %cst_30 {dimension_numbers = #tpu.dot_dimension_numbers<[1], [0], [0], [1], [0, 0, 1, 1], [], []>} : vector<8x32xf32>, vector<32x32xf32>, vector<8x32xf32> -> vector<8x32xf32>
    %c0_31 = arith.constant 0 : index
    %c0_32 = arith.constant 0 : index
    %40 = vector.load %arg17[%c0_31, %c0_32] : memref<1x32xf32, #tpu.memory_space<vmem>>, vector<1x32xf32>
    %41 = vector.broadcast %40 : vector<1x32xf32> to vector<8x32xf32>
    %42 = arith.addf %39, %41 : vector<8x32xf32>
    %c0_33 = arith.constant 0 : index
    %c0_34 = arith.constant 0 : index
    %43 = vector.load %arg10[%c0_33, %c0_34] : memref<32x32xf32, #tpu.memory_space<vmem>>, vector<32x32xf32>
    %cst_35 = arith.constant dense<0.000000e+00> : vector<8x32xf32>
    %44 = tpu.matmul %7, %43, %cst_35 {dimension_numbers = #tpu.dot_dimension_numbers<[1], [0], [0], [1], [0, 0, 1, 1], [], []>} : vector<8x32xf32>, vector<32x32xf32>, vector<8x32xf32> -> vector<8x32xf32>
    %c0_36 = arith.constant 0 : index
    %c0_37 = arith.constant 0 : index
    %45 = vector.load %arg16[%c0_36, %c0_37] : memref<1x32xf32, #tpu.memory_space<vmem>>, vector<1x32xf32>
    %46 = vector.broadcast %45 : vector<1x32xf32> to vector<8x32xf32>
    %47 = arith.addf %44, %46 : vector<8x32xf32>
    %48 = arith.mulf %24, %42 : vector<8x32xf32>
    %49 = arith.addf %47, %48 : vector<8x32xf32>
    %50 = math.tanh %49 : vector<8x32xf32>
    %cst_38 = arith.constant 1.000000e+00 : f32
    %51 = vector.broadcast %cst_38 : f32 to vector<8x32xf32>
    %52 = arith.subf %51, %37 : vector<8x32xf32>
    %53 = arith.mulf %52, %50 : vector<8x32xf32>
    %54 = arith.mulf %37, %11 : vector<8x32xf32>
    %55 = arith.addf %53, %54 : vector<8x32xf32>
    %cst_39 = arith.constant dense<0.000000e+00> : vector<8xf32>
    %56 = vector.multi_reduction <add>, %55, %cst_39 [1] : vector<8x32xf32> to vector<8xf32>
    %57 = vector.shape_cast %56 : vector<8xf32> to vector<8x1xf32>
    %cst_40 = arith.constant 3.200000e+01 : f32
    %58 = vector.broadcast %cst_40 : f32 to vector<8x1xf32>
    %59 = arith.divf %57, %58 : vector<8x1xf32>
    %60 = vector.broadcast %59 : vector<8x1xf32> to vector<8x32xf32>
    %61 = arith.subf %55, %60 : vector<8x32xf32>
    %62 = arith.mulf %61, %61 : vector<8x32xf32>
    %cst_41 = arith.constant dense<0.000000e+00> : vector<8xf32>
    %63 = vector.multi_reduction <add>, %62, %cst_41 [1] : vector<8x32xf32> to vector<8xf32>
    %64 = vector.shape_cast %63 : vector<8xf32> to vector<8x1xf32>
    %cst_42 = arith.constant 3.200000e+01 : f32
    %65 = vector.broadcast %cst_42 : f32 to vector<8x1xf32>
    %66 = arith.divf %64, %65 : vector<8x1xf32>
    %67 = vector.broadcast %59 : vector<8x1xf32> to vector<8x32xf32>
    %68 = arith.subf %55, %67 : vector<8x32xf32>
    %cst_43 = arith.constant 9.99999974E-6 : f32
    %69 = vector.broadcast %cst_43 : f32 to vector<8x1xf32>
    %70 = arith.addf %66, %69 : vector<8x1xf32>
    %71 = math.rsqrt %70 : vector<8x1xf32>
    %72 = vector.broadcast %71 : vector<8x1xf32> to vector<8x32xf32>
    %73 = arith.mulf %68, %72 : vector<8x32xf32>
    %c0_44 = arith.constant 0 : index
    %c0_45 = arith.constant 0 : index
    %74 = vector.load %arg18[%c0_44, %c0_45] : memref<1x32xf32, #tpu.memory_space<vmem>>, vector<1x32xf32>
    %75 = vector.broadcast %74 : vector<1x32xf32> to vector<8x32xf32>
    %76 = arith.mulf %73, %75 : vector<8x32xf32>
    %c0_46 = arith.constant 0 : index
    %c0_47 = arith.constant 0 : index
    %77 = vector.load %arg19[%c0_46, %c0_47] : memref<1x32xf32, #tpu.memory_space<vmem>>, vector<1x32xf32>
    %78 = vector.broadcast %77 : vector<1x32xf32> to vector<8x32xf32>
    %79 = arith.addf %76, %78 : vector<8x32xf32>
    %c0_48 = arith.constant 0 : index
    %c0_49 = arith.constant 0 : index
    %80 = vector.load %arg3[%c0_48, %c0_49] : memref<8x1xf32, #tpu.memory_space<vmem>>, vector<8x1xf32>
    %c0_50 = arith.constant 0 : index
    %c0_51 = arith.constant 0 : index
    %81 = vector.load %arg20[%c0_50, %c0_51] : memref<1x32xf32, #tpu.memory_space<vmem>>, vector<1x32xf32>
    %82 = vector.broadcast %81 : vector<1x32xf32> to vector<8x32xf32>
    %83 = arith.mulf %79, %82 : vector<8x32xf32>
    %cst_52 = arith.constant dense<0.000000e+00> : vector<8xf32>
    %84 = vector.multi_reduction <add>, %83, %cst_52 [1] : vector<8x32xf32> to vector<8xf32>
    %85 = vector.shape_cast %84 : vector<8xf32> to vector<8x1xf32>
    %c0_53 = arith.constant 0 : index
    %c0_54 = arith.constant 0 : index
    %86 = vector.load %arg21[%c0_53, %c0_54] : memref<1x1xf32, #tpu.memory_space<vmem>>, vector<1x1xf32>
    %87 = vector.broadcast %86 : vector<1x1xf32> to vector<8x1xf32>
    %88 = arith.mulf %80, %87 : vector<8x1xf32>
    %cst_55 = arith.constant dense<0.000000e+00> : vector<8xf32>
    %89 = vector.multi_reduction <add>, %88, %cst_55 [1] : vector<8x1xf32> to vector<8xf32>
    %90 = vector.shape_cast %89 : vector<8xf32> to vector<8x1xf32>
    %91 = arith.addf %85, %90 : vector<8x1xf32>
    %c0_56 = arith.constant 0 : index
    %92 = memref.load %arg25[%c0_56] : memref<1xf32, #tpu.memory_space<smem>>
    %93 = vector.broadcast %92 : f32 to vector<8x1xf32>
    %94 = arith.addf %91, %93 : vector<8x1xf32>
    %c0_57 = arith.constant 0 : index
    %c0_58 = arith.constant 0 : index
    %95 = vector.load %arg5[%c0_57, %c0_58] : memref<8x3xf32, #tpu.memory_space<vmem>>, vector<8x3xf32>
    %c0_59 = arith.constant 0 : index
    %c0_60 = arith.constant 0 : index
    %96 = vector.load %arg22[%c0_59, %c0_60] : memref<3x32xf32, #tpu.memory_space<vmem>>, vector<3x32xf32>
    %cst_61 = arith.constant dense<0.000000e+00> : vector<8x32xf32>
    %97 = tpu.matmul %95, %96, %cst_61 {dimension_numbers = #tpu.dot_dimension_numbers<[1], [0], [0], [1], [0, 0, 1, 1], [], []>} : vector<8x3xf32>, vector<3x32xf32>, vector<8x32xf32> -> vector<8x32xf32>
    %c0_62 = arith.constant 0 : index
    %c0_63 = arith.constant 0 : index
    %98 = vector.load %arg23[%c0_62, %c0_63] : memref<1x32xf32, #tpu.memory_space<vmem>>, vector<1x32xf32>
    %99 = vector.broadcast %98 : vector<1x32xf32> to vector<8x32xf32>
    %100 = arith.addf %97, %99 : vector<8x32xf32>
    %c0_64 = arith.constant 0 : index
    %c0_65 = arith.constant 0 : index
    %101 = vector.load %arg24[%c0_64, %c0_65] : memref<1x32xf32, #tpu.memory_space<vmem>>, vector<1x32xf32>
    %102 = vector.broadcast %101 : vector<1x32xf32> to vector<8x32xf32>
    %103 = arith.mulf %100, %102 : vector<8x32xf32>
    %cst_66 = arith.constant dense<0.000000e+00> : vector<8xf32>
    %104 = vector.multi_reduction <add>, %103, %cst_66 [1] : vector<8x32xf32> to vector<8xf32>
    %105 = vector.shape_cast %104 : vector<8xf32> to vector<8x1xf32>
    %106 = arith.addf %94, %105 : vector<8x1xf32>
    %c0_67 = arith.constant 0 : index
    %c0_68 = arith.constant 0 : index
    %107 = vector.load %arg26[%c0_67, %c0_68] : memref<8x1xf32, #tpu.memory_space<vmem>>, vector<8x1xf32>
    tpu.vector_store %arg26[%c0_67, %c0_68], %106 {strides = array<i32>} : memref<8x1xf32, #tpu.memory_space<vmem>>, vector<8x1xf32>,
    %c0_69 = arith.constant 0 : index
    %c0_70 = arith.constant 0 : index
    %108 = vector.load %arg27[%c0_69, %c0_70] : memref<8x32xf32, #tpu.memory_space<vmem>>, vector<8x32xf32>
    tpu.vector_store %arg27[%c0_69, %c0_70], %55 {strides = array<i32>} : memref<8x32xf32, #tpu.memory_space<vmem>>, vector<8x32xf32>,
    return
  }
  func.func @transform_0(%arg0: i32) -> (i32, i32) {
    %c0_i32 = arith.constant 0 : i32
    %c0_i32_0 = arith.constant 0 : i32
    return %arg0, %c0_i32 : i32, i32
  }
  func.func @transform_1(%arg0: i32) -> (i32, i32) {
    %c0_i32 = arith.constant 0 : i32
    %c0_i32_0 = arith.constant 0 : i32
    return %arg0, %c0_i32 : i32, i32
  }
  func.func @transform_2(%arg0: i32) -> (i32, i32) {
    %c0_i32 = arith.constant 0 : i32
    %c0_i32_0 = arith.constant 0 : i32
    return %arg0, %c0_i32 : i32, i32
  }
  func.func @transform_3(%arg0: i32) -> (i32, i32) {
    %c0_i32 = arith.constant 0 : i32
    %c0_i32_0 = arith.constant 0 : i32
    return %arg0, %c0_i32 : i32, i32
  }
  func.func @transform_4(%arg0: i32) -> (i32, i32) {
    %c0_i32 = arith.constant 0 : i32
    %c0_i32_0 = arith.constant 0 : i32
    return %arg0, %c0_i32 : i32, i32
  }
  func.func @transform_5(%arg0: i32) -> (i32, i32) {
    %c0_i32 = arith.constant 0 : i32
    %c0_i32_0 = arith.constant 0 : i32
    %c0_i32_1 = arith.constant 0 : i32
    return %c0_i32, %c0_i32_0 : i32, i32
  }
  func.func @transform_6(%arg0: i32) -> (i32, i32) {
    %c0_i32 = arith.constant 0 : i32
    %c0_i32_0 = arith.constant 0 : i32
    %c0_i32_1 = arith.constant 0 : i32
    return %c0_i32, %c0_i32_0 : i32, i32
  }
  func.func @transform_7(%arg0: i32) -> (i32, i32) {
    %c0_i32 = arith.constant 0 : i32
    %c0_i32_0 = arith.constant 0 : i32
    %c0_i32_1 = arith.constant 0 : i32
    return %c0_i32, %c0_i32_0 : i32, i32
  }
  func.func @transform_8(%arg0: i32) -> (i32, i32) {
    %c0_i32 = arith.constant 0 : i32
    %c0_i32_0 = arith.constant 0 : i32
    %c0_i32_1 = arith.constant 0 : i32
    return %c0_i32, %c0_i32_0 : i32, i32
  }
  func.func @transform_9(%arg0: i32) -> (i32, i32) {
    %c0_i32 = arith.constant 0 : i32
    %c0_i32_0 = arith.constant 0 : i32
    %c0_i32_1 = arith.constant 0 : i32
    return %c0_i32, %c0_i32_0 : i32, i32
  }
  func.func @transform_10(%arg0: i32) -> (i32, i32) {
    %c0_i32 = arith.constant 0 : i32
    %c0_i32_0 = arith.constant 0 : i32
    %c0_i32_1 = arith.constant 0 : i32
    return %c0_i32, %c0_i32_0 : i32, i32
  }
  func.func @transform_11(%arg0: i32) -> (i32, i32) {
    %c0_i32 = arith.constant 0 : i32
    %c0_i32_0 = arith.constant 0 : i32
    %c0_i32_1 = arith.constant 0 : i32
    return %c0_i32, %c0_i32_0 : i32, i32
  }
  func.func @transform_12(%arg0: i32) -> (i32, i32) {
    %c0_i32 = arith.constant 0 : i32
    %c0_i32_0 = arith.constant 0 : i32
    %c0_i32_1 = arith.constant 0 : i32
    return %c0_i32, %c0_i32_0 : i32, i32
  }
  func.func @transform_13(%arg0: i32) -> (i32, i32) {
    %c0_i32 = arith.constant 0 : i32
    %c0_i32_0 = arith.constant 0 : i32
    %c0_i32_1 = arith.constant 0 : i32
    return %c0_i32, %c0_i32_0 : i32, i32
  }
  func.func @transform_14(%arg0: i32) -> (i32, i32) {
    %c0_i32 = arith.constant 0 : i32
    %c0_i32_0 = arith.constant 0 : i32
    %c0_i32_1 = arith.constant 0 : i32
    return %c0_i32, %c0_i32_0 : i32, i32
  }
  func.func @transform_15(%arg0: i32) -> (i32, i32) {
    %c0_i32 = arith.constant 0 : i32
    %c0_i32_0 = arith.constant 0 : i32
    %c0_i32_1 = arith.constant 0 : i32
    return %c0_i32, %c0_i32_0 : i32, i32
  }
  func.func @transform_16(%arg0: i32) -> (i32, i32) {
    %c0_i32 = arith.constant 0 : i32
    %c0_i32_0 = arith.constant 0 : i32
    %c0_i32_1 = arith.constant 0 : i32
    return %c0_i32, %c0_i32_0 : i32, i32
  }
  func.func @transform_17(%arg0: i32) -> (i32, i32) {
    %c0_i32 = arith.constant 0 : i32
    %c0_i32_0 = arith.constant 0 : i32
    %c0_i32_1 = arith.constant 0 : i32
    return %c0_i32, %c0_i32_0 : i32, i32
  }
  func.func @transform_18(%arg0: i32) -> (i32, i32) {
    %c0_i32 = arith.constant 0 : i32
    %c0_i32_0 = arith.constant 0 : i32
    %c0_i32_1 = arith.constant 0 : i32
    return %c0_i32, %c0_i32_0 : i32, i32
  }
  func.func @transform_19(%arg0: i32) -> (i32, i32) {
    %c0_i32 = arith.constant 0 : i32
    %c0_i32_0 = arith.constant 0 : i32
    %c0_i32_1 = arith.constant 0 : i32
    return %c0_i32, %c0_i32_0 : i32, i32
  }
  func.func @transform_20(%arg0: i32) -> (i32, i32) {
    %c0_i32 = arith.constant 0 : i32
    %c0_i32_0 = arith.constant 0 : i32
    %c0_i32_1 = arith.constant 0 : i32
    return %c0_i32, %c0_i32_0 : i32, i32
  }
  func.func @transform_21(%arg0: i32) -> (i32, i32) {
    %c0_i32 = arith.constant 0 : i32
    %c0_i32_0 = arith.constant 0 : i32
    %c0_i32_1 = arith.constant 0 : i32
    return %c0_i32, %c0_i32_0 : i32, i32
  }
  func.func @transform_22(%arg0: i32) -> (i32, i32) {
    %c0_i32 = arith.constant 0 : i32
    %c0_i32_0 = arith.constant 0 : i32
    %c0_i32_1 = arith.constant 0 : i32
    return %c0_i32, %c0_i32_0 : i32, i32
  }
  func.func @transform_23(%arg0: i32) -> (i32, i32) {
    %c0_i32 = arith.constant 0 : i32
    %c0_i32_0 = arith.constant 0 : i32
    %c0_i32_1 = arith.constant 0 : i32
    return %c0_i32, %c0_i32_0 : i32, i32
  }
  func.func @transform_24(%arg0: i32) -> i32 {
    %c0_i32 = arith.constant 0 : i32
    %c0_i32_0 = arith.constant 0 : i32
    return %c0_i32 : i32
  }
  func.func @transform_25(%arg0: i32) -> (i32, i32) {
    %c0_i32 = arith.constant 0 : i32
    %c0_i32_0 = arith.constant 0 : i32
    return %arg0, %c0_i32 : i32, i32
  }
  func.func @transform_26(%arg0: i32) -> (i32, i32) {
    %c0_i32 = arith.constant 0 : i32
    %c0_i32_0 = arith.constant 0 : i32
    return %arg0, %c0_i32 : i32, i32
  }
}

</mosaic_0001>

<bundles_post_ra>
// kernel: r_critic_forward.1
= control target key start
LH: loop header
LB: loop body
LE: loop exit
PB: predicated region body
PF: predicated region fallthrough
CT: control target
= control target key end

     0   :  { %s839_s0 = inlined_call_operand.vmem [shape: f32[8,48], index: 0, kind: input, shape index: {}]   ;;  %s840_s1 = inlined_call_operand.vmem [shape: f32[8,32], index: 1, kind: input, shape index: {}]   ;;  %s841_s2 = inlined_call_operand.vmem [shape: f32[8,1], index: 2, kind: input, shape index: {}]   ;;  %s842_s3 = inlined_call_operand.vmem [shape: f32[8,1], index: 3, kind: input, shape index: {}]   ;;  %s843_s4 = inlined_call_operand.vmem [shape: f32[8,3], index: 4, kind: input, shape index: {}]   ;;  %s844_s5 = inlined_call_operand.vmem [shape: f32[48,32], index: 5, kind: input, shape index: {}]   ;;  %s845_s6 = inlined_call_operand.vmem [shape: f32[1,32], index: 6, kind: input, shape index: {}]   ;;  %s846_s7 = inlined_call_operand.vmem [shape: f32[32,32], index: 7, kind: input, shape index: {}]   ;;  %s847_s8 = inlined_call_operand.vmem [shape: f32[32,32], index: 8, kind: input, shape index: {}]   ;;  %s848_s9 = inlined_call_operand.vmem [shape: f32[32,32], index: 9, kind: input, shape index: {}]   ;;  %s849_s10 = inlined_call_operand.vmem [shape: f32[32,32], index: 10, kind: input, shape index: {}]   ;;  %s850_s11 = inlined_call_operand.vmem [shape: f32[32,32], index: 11, kind: input, shape index: {}]   ;;  %s851_s12 = inlined_call_operand.vmem [shape: f32[32,32], index: 12, kind: input, shape index: {}]   ;;  %s852_s13 = inlined_call_operand.vmem [shape: f32[1,32], index: 13, kind: input, shape index: {}]   ;;  %s853_s14 = inlined_call_operand.vmem [shape: f32[1,32], index: 14, kind: input, shape index: {}]   ;;  %s854_s15 = inlined_call_operand.vmem [shape: f32[1,32], index: 15, kind: input, shape index: {}]   ;;  %s855_s16 = inlined_call_operand.vmem [shape: f32[1,32], index: 16, kind: input, shape index: {}]   ;;  %s856_s17 = inlined_call_operand.vmem [shape: f32[1,32], index: 17, kind: input, shape index: {}]   ;;  %s857_s18 = inlined_call_operand.vmem [shape: f32[1,32], index: 18, kind: input, shape index: {}]   ;;  %s858_s19 = inlined_call_operand.vmem [shape: f32[1,32], index: 19, kind: input, shape index: {}]   ;;  %s859_s20 = inlined_call_operand.<no memory space> [shape: f32[1,1], index: 20, kind: input, shape index: {}]   ;;  %s860_s21 = inlined_call_operand.vmem [shape: f32[3,32], index: 21, kind: input, shape index: {}]   ;;  %s861_s22 = inlined_call_operand.vmem [shape: f32[1,32], index: 22, kind: input, shape index: {}]   ;;  %s862_s23 = inlined_call_operand.vmem [shape: f32[1,32], index: 23, kind: input, shape index: {}]   ;;  %s863_s24 = inlined_call_operand.<no memory space> [shape: f32[1], index: 24, kind: input, shape index: {}]   ;;  %s864_s25 = inlined_call_operand.vmem [shape: f32[8,1], index: 25, kind: output, shape index: {0}]   ;;  %s865_s26 = inlined_call_operand.hbm [shape: f32[8,32], index: 26, kind: output, shape index: {1}]  }
   0x1   :  { %871 = sst [smem:[#allocation7_spill]] %s839_s0  ;;  %v32_v0 = vstv %s859_s20 }
   0x2   :  { %872 = sst [smem:[#allocation8_spill]] %s840_s1  ;;  %33 = vst [vmem:[#allocation2] sm:$0x1] %v32_v0 }
   0x3   :  { %873 = sst [smem:[#allocation9_spill]] %s841_s2 }
   0x4   :  { %874 = sst [smem:[#allocation10_spill]] %s842_s3 }
   0x5   :  { %875 = sst [smem:[#allocation11_spill]] %s843_s4 }
   0x6   :  { %876 = sst [smem:[#allocation12_spill]] %s844_s5 }
   0x7   :  { %877 = sst [smem:[#allocation13_spill]] %s845_s6 }
   0x8   :  { %878 = sst [smem:[#allocation14_spill]] %s846_s7 }
   0x9   :  { %879 = sst [smem:[#allocation15_spill]] %s847_s8 }
   0xa   :  { %880 = sst [smem:[#allocation16_spill]] %s848_s9 }
   0xb   :  { %881 = sst [smem:[#allocation17_spill]] %s849_s10 }
   0xc   :  { %s882_s8 = sld [smem:[#allocation12_spill]]  ;;  %v534_v4 = vmov 0   ;;  %v216_v8 = vld [vmem:[%s850_s11 + $0x18] sm:$0xff]  ;;  %v215_v10 = vld [vmem:[%s850_s11 + $0x10] sm:$0xff]  ;;  %v214_v13 = vld [vmem:[%s850_s11 + $0x8] sm:$0xff] }
   0xd   :  { %482 = vset.pattern.permute.xlu0 %v534_v4  ;;  %s883_s10 = sld [smem:[#allocation10_spill]]  ;;  %229 = vmatpush.msra.mxu3 %v216_v8 }
   0xe   :  { %s884_s27 = sld [smem:[#allocation17_spill]] }
   0xf   :  { %230 = vmatpush.msra.mxu3 %v215_v10 }
  0x11   :  { %231 = vmatpush.msra.mxu3 %v214_v13 }
  0x12   :  { %v92_v1 = vld [vmem:[%s882_s8 + $0x28] sm:$0xff]  ;;  %v91_v2 = vld [vmem:[%s882_s8 + $0x20] sm:$0xff]  ;;  %v90_v3 = vld [vmem:[%s882_s8 + $0x18] sm:$0xff] }
  0x13   :  { %111 = vmatpush.msra.mxu0 %v92_v1  ;;  %v89_v5 = vld [vmem:[%s882_s8 + $0x10] sm:$0xff]  ;;  %v123_v6 = vld [vmem:[%s883_s10] sm:$0xff]  ;;  %v88_v11 = vld [vmem:[%s882_s8 + $0x8] sm:$0xff] }
  0x14   :  { %v137_v7 = vld [vmem:[%s884_s27 + $0x18] sm:$0xff]  ;;  %126 = vperm.xlu0 %482, %v123_v6   ;;  %v136_v9 = vld [vmem:[%s884_s27 + $0x10] sm:$0xff]  ;;  %v135_v12 = vld [vmem:[%s884_s27 + $0x8] sm:$0xff] }
  0x15   :  { %112 = vmatpush.msra.mxu0 %v91_v2  ;;  %154 = vmatpush.msra.mxu1 %v137_v7  ;;  %v87_v14 = vld [vmem:[%s882_s8] sm:$0xff] }
  0x17   :  { %113 = vmatpush.msra.mxu0 %v90_v3  ;;  %155 = vmatpush.msra.mxu1 %v136_v9 }
  0x19   :  { %114 = vmatpush.msra.mxu0 %v89_v5  ;;  %156 = vmatpush.msra.mxu1 %v135_v12 }
  0x1a   :  { %35 = vsyncpa [#allocation5], 0  ;;  %s885_s28 = sld [smem:[#allocation7_spill]]  ;;  %vm97_vm0 = vcmask 392192   ;;  %v134_v16 = vld [vmem:[%s884_s27] sm:$0xff]  ;;  %v284_v30 = vld [vmem:[%s851_s12 + $0x18] sm:$0xff] }
  0x1b   :  { %115 = vmatpush.msra.mxu0 %v88_v11  ;;  %v213_v17 = vld [vmem:[%s850_s11] sm:$0xff]  ;;  %157 = vmatpush.msra.mxu1 %v134_v16  ;;  %s886_s2 = sld [smem:[#allocation14_spill]]  ;;  %v283_v31 = vld [vmem:[%s851_s12 + $0x10] sm:$0xff]  ;;  %v282_v32 = vld [vmem:[%s851_s12 + $0x8] sm:$0xff]  ;;  %vm138_vm1 = vcmask 261120   ;;  %vm412_vm10 = vcmask 1042432  }
  0x1c   :  { %232 = vmatpush.msra.mxu3 %v213_v17  ;;  %s887_s10 = sld [smem:[#allocation15_spill]]  ;;  %v281_v34 = vld [vmem:[%s851_s12] sm:$0xff]  ;;  %vm408_vm11 = vcmask 23552   ;;  %s536_s1 = smov [#allocation4]  }
  0x1d   :  { %116 = vmatpush.msra.mxu0 %v87_v14  ;;  %s888_s3 = sld [smem:[#allocation16_spill]]  ;;  %v484_v42 = vld [vmem:[%s853_s14] ss:$0 sm:$0xff]  ;;  %s457_s11 = sshll.u32 %s865_s26, 4  ;;  %s458_s11 = int_to_ptr.hbm [resolvable:$true] %s457_s11 }
  0x1e   :  { %s890_s27 = sld [smem:[#allocation13_spill]]  ;;  %v485_v48 = vld [vmem:[%s852_s13] ss:$0 sm:$0xff] }
  0x1f   :  { %v487_v2 = vld [vmem:[%s855_s16] ss:$0 sm:$0xff] }
  0x20   :  { %v86_v15 = vld [vmem:[%s885_s28] sm:$0xff]  ;;  %s892_s28 = sld [smem:[#allocation9_spill]] }
  0x21   :  { %468 = vmatmul.msk.f32.vlgmr.msra.gmra.mxu0 %vm97_vm0, %v86_v15  ;;  %v133_v18 = vld [vmem:[%s886_s2 + $0x18] sm:$0xff]  ;;  %v132_v21 = vld [vmem:[%s886_s2 + $0x10] sm:$0xff]  ;;  %v131_v24 = vld [vmem:[%s886_s2 + $0x8] sm:$0xff]  ;;  %vm445_vm0 = vcmask 7168  }
  0x22   :  { %v212_v19 = vld [vmem:[%s887_s10 + $0x18] sm:$0xff]  ;;  %177 = vmatpush.msra.mxu2 %v133_v18  ;;  %v211_v22 = vld [vmem:[%s887_s10 + $0x10] sm:$0xff]  ;;  %v210_v25 = vld [vmem:[%s887_s10 + $0x8] sm:$0xff] }
  0x23   :  { %v312_v20 = vld [vmem:[%s888_s3 + $0x18] sm:$0xff]  ;;  %249 = vmatpush.msrb.mxu1 %v212_v19  ;;  %v311_v23 = vld [vmem:[%s888_s3 + $0x10] sm:$0xff]  ;;  %v310_v26 = vld [vmem:[%s888_s3 + $0x8] sm:$0xff] }
  0x24   :  { %329 = vmatpush.msrb.mxu3 %v312_v20  ;;  %178 = vmatpush.msra.mxu2 %v132_v21  ;;  %v130_v27 = vld [vmem:[%s886_s2] sm:$0xff]  ;;  %s891_s2 = sld [smem:[#allocation11_spill]] }
  0x25   :  { %250 = vmatpush.msrb.mxu1 %v211_v22  ;;  %v209_v28 = vld [vmem:[%s887_s10] sm:$0xff] }
  0x26   :  { %330 = vmatpush.msrb.mxu3 %v311_v23  ;;  %179 = vmatpush.msra.mxu2 %v131_v24  ;;  %v309_v29 = vld [vmem:[%s888_s3] sm:$0xff]  ;;  %s889_s3 = sld [smem:[#allocation8_spill]] }
  0x27   :  { %251 = vmatpush.msrb.mxu1 %v210_v25  ;;  %v483_v37 = vld [vmem:[%s890_s27] ss:$0 sm:$0xff]  ;;  %s455_s27 = sshll.u32 %s536_s1, 4  ;;  %s456_s27 = int_to_ptr.vmem [resolvable:$true] %s455_s27 }
  0x28   :  { %331 = vmatpush.msrb.mxu3 %v310_v26  ;;  %180 = vmatpush.msra.mxu2 %v130_v27  ;;  %v486_v5 = vld [vmem:[%s854_s15] ss:$0 sm:$0xff]  ;;  %v535_v27 = vmov 32.0  }
  0x29   :  { %252 = vmatpush.msrb.mxu1 %v209_v28  ;;  %v403_v28 = vld [vmem:[%s860_s21] sm:$0x7] }
  0x2a   :  { %332 = vmatpush.msrb.mxu3 %v309_v29  ;;  %301 = vmatpush.msrb.mxu2 %v284_v30  ;;  %v402_v29 = vld [vmem:[%s891_s2] sm:$0xff] }
  0x2b   :  { %477 = vmatpush.msk.msrb.mxu0 %vm412_vm10, %v403_v28 }
  0x2c   :  { %302 = vmatpush.msrb.mxu2 %v283_v31  ;;  %v122_v33 = vld [vmem:[%s889_s3] sm:$0xff]  ;;  %478 = vmatmul.msk.f32.vlgmr.msrb.gmra.mxu0 %vm408_vm11, %v402_v29 }
  0x2e   :  { %303 = vmatpush.msrb.mxu2 %v282_v32 }
  0x30   :  { %304 = vmatpush.msrb.mxu2 %v281_v34 }
  0x86   :  { %v127_v35 = vpop.permute.xlu0 %126 }
  0x87   :  { %v774_v36 = vmul.f32 %v127_v35, %v122_v33 }
  0x89   :  { %469 = vmatmul.msk.f32.vlgmr.msra.gmra.mxu1 %vm138_vm1, %v774_v36  ;;  %472 = vmatmul.msk.f32.vlgmr.msra.gmra.mxu3 %vm138_vm1, %v774_v36 }
  0x9e   :  { %v118_v38 = vpop.f32.mrf.mxu0 }
  0x9f   :  { %v119_v39 = vadd.f32 %v483_v37, %v118_v38 }
  0xa1   :  { %v121_v40 = vmax.f32 %v119_v39, 0.0 }
  0xa3   :  { %470 = vmatmul.msk.f32.vlgmr.msra.gmra.mxu2 %vm138_vm1, %v121_v40  ;;  %473 = vmatmul.msk.f32.vlgmr.msrb.gmra.mxu1 %vm138_vm1, %v121_v40 }
  0xa4   :  { %476 = vmatmul.msk.f32.vlgmr.msrb.gmra.mxu3 %vm138_vm1, %v121_v40 }
  0xab   :  { %475 = vmatmul.msk.f32.vlgmr.msrb.gmra.mxu2 %vm138_vm1, %v774_v36 }
 0x106   :  { %v159_v41 = vpop.f32.mrf.mxu1 }
 0x10c   :  { %v234_v43 = vpop.f32.mrf.mxu3 }
 0x120   :  { %v254_v44 = vpop.f32.mrf.mxu1 }
 0x121   :  { %v255_v45 = vadd.f32 %v254_v44, %v234_v43 }
 0x123   :  { %v261_v46 = vadd.f32 %v484_v42, %v255_v45  ;;  %v433_v42 = vpop.f32.mrf.mxu0  ;;  %v492_v45 = vld [vmem:[%s862_s23] ss:$0 sm:$0xff] }
 0x125   :  { %v474_v47 = vmul.f32 -1.442695, %v261_v46 }
 0x126   :  { %v182_v49 = vpop.f32.mrf.mxu2 }
 0x127   :  { %494 = vpow2.f32 %v474_v47  ;;  %v183_v50 = vadd.f32 %v182_v49, %v159_v41  ;;  %v334_v7 = vpop.f32.mrf.mxu3  ;;  %v488_v41 = vld [vmem:[%s861_s22] ss:$0 sm:$0xff] }
 0x128   :  { %v335_v13 = vadd.f32 %v486_v5, %v334_v7  ;;  %v434_v43 = vadd.f32 %v488_v41, %v433_v42  ;;  %v400_v5 = vstv %s863_s24 }
 0x129   :  { %v189_v51 = vadd.f32 %v485_v48, %v183_v50 }
 0x12a   :  { %v440_v47 = vmul.f32 %v492_v45, %v434_v43 }
 0x12b   :  { %v471_v52 = vmul.f32 -1.442695, %v189_v51 }
 0x12c   :  { %v441_v49 = vsel %vm138_vm1, %v440_v47, 0.0 }
 0x12d   :  { %v495_v53 = vpop.eup %494  ;;  %496 = vpow2.f32 %v471_v52  ;;  %442 = vadd.xlane.f32.xlu2 %v441_v49 }
 0x12e   :  { %v265_v54 = vadd.f32 1.0, %v495_v53  ;;  %v306_v3 = vpop.f32.mrf.mxu2 }
 0x12f   :  { %v307_v10 = vadd.f32 %v487_v2, %v306_v3  ;;  %v383_v2 = vld [vmem:[%s892_s28] sm:$0xff] }
 0x130   :  { %498 = vrcp.f32 %v265_v54  ;;  %v277_v15 = vand.u32 2147483648, %v265_v54  ;;  %vm271_vm7 = vweird.f32 %v265_v54  ;;  %v275_v16 = vand.u32 2147483647, %v265_v54 }
 0x132   :  { %v278_v19 = vor.u32 1.1754944e-38, %v277_v15  ;;  %vm276_vm9 = vcmp.eq.f32.partialorder %v275_v16, 8.507059e+37 }
 0x133   :  { %v497_v55 = vpop.eup %496 }
 0x134   :  { %v193_v56 = vadd.f32 1.0, %v497_v55 }
 0x136   :  { %500 = vrcp.f32 %v193_v56  ;;  %v499_v57 = vpop.eup %498  ;;  %v205_v63 = vand.u32 2147483648, %v193_v56  ;;  %v203_v1 = vand.u32 2147483647, %v193_v56  ;;  %vm199_vm3 = vweird.f32 %v193_v56 }
 0x137   :  { %v267_v58 = vmul.f32 %v499_v57, %v265_v54  ;;  %vm272_vm6 = vweird.f32 %v499_v57 }
 0x138   :  { %v206_v8 = vor.u32 1.1754944e-38, %v205_v63  ;;  %vm204_vm5 = vcmp.eq.f32.partialorder %v203_v1, 8.507059e+37  ;;  %vm273_vm8 = vmor %vm271_vm7, %vm272_vm6  ;;  %v493_v1 = vld [vmem:[#allocation2] ss:$0 sm:$0xff] }
 0x139   :  { %v268_v61 = vsub.f32 1.0, %v267_v58  ;;  %v396_v3 = vmul.f32 %v493_v1, %v383_v2 }
 0x13b   :  { %v269_v4 = vmul.f32 %v499_v57, %v268_v61  ;;  %v491_v61 = vld [vmem:[%s858_s19] ss:$0 sm:$0xff] }
 0x13c   :  { %v501_v59 = vpop.eup %500 }
 0x13d   :  { %v195_v60 = vmul.f32 %v501_v59, %v193_v56  ;;  %vm200_vm2 = vweird.f32 %v501_v59  ;;  %v270_v12 = vadd.f32 %v499_v57, %v269_v4  ;;  %v489_v56 = vld [vmem:[%s856_s17] ss:$0 sm:$0xff] }
 0x13e   :  { %vm201_vm4 = vmor %vm199_vm3, %vm200_vm2 }
 0x13f   :  { %v196_v62 = vsub.f32 1.0, %v195_v60  ;;  %v274_v18 = vsel %vm273_vm8, %v499_v57, %v270_v12 }
 0x140   :  { %v279_v20 = vsel %vm276_vm9, %v278_v19, %v274_v18 }
 0x141   :  { %v197_v0 = vmul.f32 %v501_v59, %v196_v62  ;;  %v340_v21 = vsub.f32 1.0, %v279_v20  ;;  %v342_v24 = vmul.f32 %v279_v20, %v774_v36 }
 0x143   :  { %v198_v6 = vadd.f32 %v501_v59, %v197_v0 }
 0x145   :  { %v202_v9 = vsel %vm201_vm4, %v501_v59, %v198_v6  ;;  %v490_v59 = vld [vmem:[%s857_s18] ss:$0 sm:$0xff] }
 0x146   :  { %v207_v11 = vsel %vm204_vm5, %v206_v8, %v202_v9 }
 0x147   :  { %v337_v14 = vmul.f32 %v307_v10, %v207_v11 }
 0x149   :  { %v338_v17 = vadd.f32 %v337_v14, %v335_v13 }
 0x14b   :  { %502 = vtanh.f32 %v338_v17 }
 0x14c   :  { %504 = vrcp.f32 %v535_v27 }
 0x151   :  { %v503_v22 = vpop.eup %502 }
 0x152   :  { %v341_v23 = vmul.f32 %v503_v22, %v340_v21  ;;  %v505_v30 = vpop.eup %504 }
 0x153   :  { %v348_v31 = vmul.f32 32.0, %v505_v30  ;;  %vm352_vm12 = vweird.f32 %v505_v30 }
 0x154   :  { %v343_v25 = vadd.f32 %v342_v24, %v341_v23 }
 0x155   :  { %v349_v32 = vsub.f32 1.0, %v348_v31 }
 0x156   :  { %v344_v26 = vsel %vm138_vm1, %v343_v25, 0.0  ;;  %447 = vst.msk [vmem:[#allocation4] sm:$0xff] %vm138_vm1, %v343_v25 }
 0x157   :  { %345 = vadd.xlane.f32.xlu0 %v344_v26  ;;  %v350_v33 = vmul.f32 %v505_v30, %v349_v32  ;;  %460 = dma.vmem_to_hbm [thread:$0]  %s456_s27, 128, %s458_s11, [#allocation5]  }
 0x159   :  { %v351_v34 = vadd.f32 %v505_v30, %v350_v33 }
 0x15b   :  { %v353_v35 = vsel %vm352_vm12, %v505_v30, %v351_v34 }
 0x1a0   :  { %v443_v7 = vpop.xlane.xlu2 %442 }
 0x1ca   :  { %v346_v36 = vpop.xlane.xlu0 %345 }
 0x1cb   :  { %v354_v37 = vmul.f32 %v353_v35, %v346_v36 }
 0x1cd   :  { %v355_v38 = vsub.f32 %v343_v25, %v354_v37 }
 0x1cf   :  { %v356_v39 = vmul.f32 %v355_v38, %v355_v38 }
 0x1d1   :  { %v357_v40 = vsel %vm138_vm1, %v356_v39, 0.0 }
 0x1d2   :  { %358 = vadd.xlane.f32.xlu1 %v357_v40 }
 0x245   :  { %v359_v44 = vpop.xlane.xlu1 %358 }
 0x246   :  { %v360_v46 = vmul.f32 %v359_v44, %v353_v35 }
 0x248   :  { %v361_v48 = vadd.f32 1e-05, %v360_v46 }
 0x24a   :  { %506 = vrsqrt.f32 %v361_v48  ;;  %vm368_vm14 = vweird.f32 %v361_v48 }
 0x250   :  { %v507_v50 = vpop.eup %506 }
 0x251   :  { %v363_v51 = vmul.f32 %v507_v50, %v361_v48  ;;  %vm369_vm13 = vweird.f32 %v507_v50 }
 0x252   :  { %vm370_vm15 = vmor %vm368_vm14, %vm369_vm13 }
 0x253   :  { %v364_v52 = vmul.f32 %v507_v50, %v363_v51 }
 0x255   :  { %v365_v53 = vmul.f32 0.5, %v364_v52 }
 0x257   :  { %v366_v54 = vsub.f32 1.5, %v365_v53 }
 0x259   :  { %v367_v55 = vmul.f32 %v507_v50, %v366_v54 }
 0x25b   :  { %v371_v57 = vsel %vm370_vm15, %v507_v50, %v367_v55 }
 0x25c   :  { %v372_v58 = vmul.f32 %v371_v57, %v355_v38 }
 0x25e   :  { %v377_v60 = vmul.f32 %v489_v56, %v372_v58 }
 0x260   :  { %v382_v62 = vadd.f32 %v490_v59, %v377_v60 }
 0x262   :  { %v388_v63 = vmul.f32 %v491_v61, %v382_v62 }
 0x264   :  { %v389_v0 = vsel %vm138_vm1, %v388_v63, 0.0 }
 0x265   :  { %390 = vadd.xlane.f32.xlu1 %v389_v0 }
 0x2d8   :  { %v391_v4 = vpop.xlane.xlu1 %390 }
 0x2d9   :  { %v398_v6 = vadd.f32 %v396_v3, %v391_v4 }
 0x2db   :  { %v401_v8 = vadd.f32 %v400_v5, %v398_v6 }
 0x2dd   :  { %v444_v9 = vadd.f32 %v443_v7, %v401_v8 }
 0x2df   :  { %446 = vst.msk [vmem:[%s864_s25] sm:$0xff] %vm445_vm0, %v444_v9 }
 0x2e0   :  { %532 = dma.done.wait [#allocation5], 128  }
 0x2e1   :  { %533 = vsyncadd [#allocation5], 4294967168 }
 0x2e2   :  { %467 = vsyncpa [#allocation5], 1 }

</bundles_post_ra>
